<compile_context>
chip_gen: v5e
topology: v5e:2x2
jax: 0.10.0
libtpu: 0.0.40
codegen_flags: <defaults>
</compile_context>

<pallas_src>
import math

import jax
import jax.numpy as jnp
from jax import lax
from jax.experimental import pallas as pl
from jax.experimental.pallas import tpu as pltpu

LOG2 = math.log(2.0)
NEG_BIG = -1e30   # "never wins a max / exp underflows to 0" sentinel for padded edges


def _round_up(x, m):
    return ((x + m - 1) // m) * m


def update_v_kernel(boff_ref, nblk_ref,          # scalar-prefetch (SMEM)
                    idx_ref, v_ref, e_ref, w1_ref, b1_ref, w2_ref, b2_ref,
                    out_ref, m_ref, den_ref, num_ref):
    i = pl.program_id(0)          # node tile     (parallel)
    k = pl.program_id(1)          # local edge block within this node tile (reduction)

    @pl.when(k == 0)
    def _init():
        m_ref[...] = jnp.full(m_ref.shape, NEG_BIG, jnp.float32)
        den_ref[...] = jnp.zeros_like(den_ref)
        num_ref[...] = jnp.zeros_like(num_ref)

    # Only the first nblk[i] blocks carry this tile's edges; later steps are clamped
    # repeats of the last block (no re-DMA, compute skipped here).
    @pl.when(k < nblk_ref[i])
    def _accumulate():
        e = e_ref[...].astype(jnp.float32)                    # [TE, F] (F lane-dense)
        TN, F = den_ref.shape
        TE = e.shape[0]

        # One-hot membership: local node row == (idx - tile offset).
        # Padded edges have idx = -1 and never match.  Offset applied on [1, TE].
        idx_local = idx_ref[...] - i * TN                     # [1, TE] int32
        rows = lax.broadcasted_iota(jnp.int32, (TN, TE), 0)
        M = (rows == idx_local).astype(jnp.bfloat16)          # exact 0/1 in bf16

        # Flash-style online per-feature max (softmax ratio is shift-invariant).
        m_old = m_ref[...]                                    # [1, F]
        m_new = jnp.maximum(m_old, jnp.max(e, axis=0, keepdims=True))
        scale = jnp.exp(m_old - m_new)                        # rescale prior partial sums

        p = jnp.exp(e - m_new)                                # [TE, F]  (EUP)
        # Single fused [TN,TE]x[TE,2F] bf16 MXU matmul computes den and num together.
        # (On v5e, if the single vst slot saturates, split into two dots instead.)
        cat = jnp.concatenate([p, p * e], axis=1).astype(jnp.bfloat16)   # [TE, 2F]
        acc = jnp.dot(M, cat, preferred_element_type=jnp.float32)        # [TN, 2F]

        den_ref[...] = den_ref[...] * scale + acc[:, :F]      # segment sum exp
        num_ref[...] = num_ref[...] * scale + acc[:, F:]      # segment sum e*exp
        m_ref[...] = m_new

    @pl.when(k == pl.num_programs(1) - 1)
    def _finalize():
        # agg = num / (den + 1e-16)   (PyG adds 1e-16; empty segments -> 0)
        inv = pl.reciprocal(den_ref[...] + 1e-16, approx=True)
        agg = num_ref[...] * inv                                          # [TN, F]

        # lin1 -> shifted softplus -> lin2 -> residual add (f32, once per node tile)
        h1 = jnp.dot(agg, w1_ref[...], preferred_element_type=jnp.float32) + b1_ref[...]
        sp = jnp.where(h1 > 20.0, h1, jnp.log1p(jnp.exp(jnp.minimum(h1, 20.0))))
        h2 = jnp.dot(sp - LOG2, w2_ref[...], preferred_element_type=jnp.float32) + b2_ref[...]

        out_ref[...] = (v_ref[...].astype(jnp.float32) + h2).astype(out_ref.dtype)


def update_v_forward(v, e, edge_index, w1, b1, w2, b2):
    """v: [N, H]; e: [E, F]; edge_index: [2, E] int; w1: [F, H]; w2: [H, H]."""
    N, H = v.shape
    E, F = e.shape

    F_pad = _round_up(F, 128)
    H_pad = _round_up(H, 128)

    # Node tile: aim for >=2 tiles when N allows (both v7x TensorCores), cap at 256.
    TN = min(256, _round_up(max(1, -(-N // 2)), 8))
    N_pad = _round_up(N, TN)
    num_tiles = N_pad // TN

    # Edge tile: large to amortize ~0.35us/step pipeline overhead; lane-dense features.
    TE = min(2048, _round_up(E, 128))
    KB = max(1, -(-E // TE))            # static bound on edge blocks per node tile
    TB = E // TE + num_tiles            # static bound on total packed edge blocks
    E_packed = TB * TE

    idx = edge_index[1].astype(jnp.int32)

    # ---- CSR-style packing: sort edges by target node and bucket them into
    #      TE-aligned, per-node-tile block ranges so each edge is processed once.
    order = jnp.argsort(idx)                                   # stable sort by target
    idx_s = idx[order]
    e_s = e[order]
    tile_s = idx_s // TN                                       # owning node tile of each edge
    cnt = jnp.zeros((num_tiles,), jnp.int32).at[tile_s].add(1)               # edges per tile
    nblk = jnp.maximum(1, (cnt + TE - 1) // TE).astype(jnp.int32)            # >=1 block per tile
    boff = (jnp.cumsum(nblk) - nblk).astype(jnp.int32)                       # first block of tile
    start = (jnp.cumsum(cnt) - cnt).astype(jnp.int32)                        # first sorted edge of tile
    pos = boff[tile_s] * TE + (jnp.arange(E, dtype=jnp.int32) - start[tile_s])

    # Packed arrays: padded rows get idx = -1 (never match) and e = -1e30
    # (never win the running max, exp underflows to exactly 0).
    idx_p = jnp.full((1, E_packed), -1, jnp.int32).at[0, pos].set(idx_s)
    e_rows = jnp.zeros((E, F_pad), e.dtype).at[:, :F].set(e_s)      # keep native dtype in HBM
    e_p = jnp.full((E_packed, F_pad), NEG_BIG, e.dtype).at[pos].set(e_rows)

    v_p = jnp.zeros((N_pad, H_pad), v.dtype).at[:N, :H].set(v)
    w1_p = jnp.zeros((F_pad, H_pad), jnp.float32).at[:F, :H].set(w1.astype(jnp.float32))
    w2_p = jnp.zeros((H_pad, H_pad), jnp.float32).at[:H, :H].set(w2.astype(jnp.float32))
    b1_p = jnp.zeros((1, H_pad), jnp.float32).at[0, :H].set(b1.astype(jnp.float32))
    b2_p = jnp.zeros((1, H_pad), jnp.float32).at[0, :H].set(b2.astype(jnp.float32))

    # Data-dependent index maps (scalar-prefetched boff/nblk): edge block for
    # (node tile i, local block k) is boff[i] + k, clamped so k >= nblk[i]
    # re-points at the last block (Pallas skips the redundant DMA; kernel skips compute).
    def _edge_map(i, k, boff_ref, nblk_ref):
        return (boff_ref[i] + jnp.minimum(k, nblk_ref[i] - 1), 0)

    def _idx_map(i, k, boff_ref, nblk_ref):
        return (0, boff_ref[i] + jnp.minimum(k, nblk_ref[i] - 1))

    node_map = lambda i, k, *_: (i, 0)
    const_map = lambda i, k, *_: (0, 0)

    grid = (num_tiles, KB)

    out = pl.pallas_call(
        update_v_kernel,
        out_shape=jax.ShapeDtypeStruct((N_pad, H_pad), v.dtype),
        grid_spec=pltpu.PrefetchScalarGridSpec(
            num_scalar_prefetch=2,
            grid=grid,
            in_specs=[
                pl.BlockSpec((1, TE), _idx_map),            # edge target ids (CSR-packed)
                pl.BlockSpec((TN, H_pad), node_map),        # v (node tile)
                pl.BlockSpec((TE, F_pad), _edge_map),       # e (CSR-packed edge block)
                pl.BlockSpec((F_pad, H_pad), const_map),    # w1 (resident)
                pl.BlockSpec((1, H_pad), const_map),        # b1
                pl.BlockSpec((H_pad, H_pad), const_map),    # w2
                pl.BlockSpec((1, H_pad), const_map),        # b2
            ],
            out_specs=pl.BlockSpec((TN, H_pad), node_map),
            scratch_shapes=[
                pltpu.VMEM((1, F_pad), jnp.float32),        # running per-feature max
                pltpu.VMEM((TN, F_pad), jnp.float32),       # denominator accumulator
                pltpu.VMEM((TN, F_pad), jnp.float32),       # numerator accumulator
            ],
        ),
        compiler_params=pltpu.CompilerParams(
            dimension_semantics=("parallel", "arbitrary"),
            vmem_limit_bytes=32 * 1024 * 1024,              # raise v5e's 16 MiB default
        ),
    )(boff, nblk, idx_p, v_p, e_p, w1_p, b1_p, w2_p, b2_p)

    return out[:N, :H]


def update_v_reference(v, e, edge_index, w1, b1, w2, b2):
    """Pure-JAX reference (PyG SoftmaxAggregation t=1 + lin1/act/lin2 + residual)."""
    idx = edge_index[1]
    N = v.shape[0]
    F = e.shape[1]
    e = e.astype(jnp.float32)
    seg_max = jnp.full((N, F), -jnp.inf, jnp.float32).at[idx].max(e)
    seg_max = jnp.where(jnp.isinf(seg_max), 0.0, seg_max)
    p = jnp.exp(e - seg_max[idx])
    den = jnp.zeros((N, F), jnp.float32).at[idx].add(p) + 1e-16
    num = jnp.zeros((N, F), jnp.float32).at[idx].add(p * e)
    agg = num / den
    h1 = agg @ w1 + b1
    sp = jnp.where(h1 > 20.0, h1, jnp.log1p(jnp.exp(jnp.minimum(h1, 20.0)))) - LOG2
    return v + sp @ w2 + b2


if __name__ == "__main__":
    key = jax.random.PRNGKey(0)

    # Small shapes consistent with the module.
    N = 8                       # number of nodes
    E = 32                      # number of edges
    hidden_channels = 32        # H
    var_effective_patch_dim = 8
    var_num_patches = 2
    F_total = var_effective_patch_dim * var_num_patches   # edge feature dim = lin1 input dim

    k_v, k_e, k_tgt, k_src, k_w1, k_w2 = jax.random.split(key, 6)

    v = jax.random.normal(k_v, (N, hidden_channels), jnp.float32)
    e = jax.random.normal(k_e, (E, F_total), jnp.float32)

    # Target indices: guarantee every node appears at least once (so dim_size == N like PyG).
    tgt = jnp.concatenate([
        jnp.arange(N, dtype=jnp.int32),
        jax.random.randint(k_tgt, (E - N,), 0, N, dtype=jnp.int32),
    ])
    src = jax.random.randint(k_src, (E,), 0, N, dtype=jnp.int32)
    edge_index = jnp.stack([src, tgt], axis=0)   # [2, E]

    # Deterministic parameter init (xavier_uniform for weights, zeros for biases),
    # stored as [in, out] so the kernel computes x @ W + b.
    a1 = math.sqrt(6.0 / (F_total + hidden_channels))
    w1 = jax.random.uniform(k_w1, (F_total, hidden_channels), jnp.float32, -a1, a1)
    a2 = math.sqrt(6.0 / (hidden_channels + hidden_channels))
    w2 = jax.random.uniform(k_w2, (hidden_channels, hidden_channels), jnp.float32, -a2, a2)
    b1 = jnp.zeros((hidden_channels,), jnp.float32)
    b2 = jnp.zeros((hidden_channels,), jnp.float32)

    out = update_v_forward(v, e, edge_index, w1, b1, w2, b2)
    jax.block_until_ready(out)
    assert out.shape == (N, hidden_channels)

    ref = update_v_reference(v, e, edge_index, w1, b1, w2, b2)
    max_err = float(jnp.max(jnp.abs(out - ref)))
    assert max_err < 5e-2, f"max abs error vs reference too large: {max_err}"

    print("KERNEL_OK")
</pallas_src>

<mosaic_0001>
module attributes {stable_mosaic.version = 11 : i64} {
  func.func @update_v_kernel(%arg0: i32, %arg1: i32, %arg2: memref<1xi32, #tpu.memory_space<smem>>, %arg3: memref<1xi32, #tpu.memory_space<smem>>, %arg4: memref<1x128xi32, #tpu.memory_space<vmem>>, %arg5: memref<8x128xf32, #tpu.memory_space<vmem>>, %arg6: memref<128x128xf32, #tpu.memory_space<vmem>>, %arg7: memref<128x128xf32, #tpu.memory_space<vmem>>, %arg8: memref<1x128xf32, #tpu.memory_space<vmem>>, %arg9: memref<128x128xf32, #tpu.memory_space<vmem>>, %arg10: memref<1x128xf32, #tpu.memory_space<vmem>>, %arg11: memref<8x128xf32, #tpu.memory_space<vmem>>, %arg12: memref<1x128xf32, #tpu.memory_space<vmem>>, %arg13: memref<8x128xf32, #tpu.memory_space<vmem>>, %arg14: memref<8x128xf32, #tpu.memory_space<vmem>>) attributes {dimension_semantics = [#tpu.dimension_semantics<parallel>, #tpu.dimension_semantics<arbitrary>], iteration_bounds = array<i64: 1, 1>, scalar_prefetch = 2 : i64, scratch_operands = 3 : i64, tpu.core_type = #tpu.core_type<tc>, window_params = [{transform_indices = @transform_0, window_bounds = array<i64: 1, 128>}, {transform_indices = @transform_1, window_bounds = array<i64: 8, 128>}, {transform_indices = @transform_2, window_bounds = array<i64: 128, 128>}, {pipeline_mode = #tpu.pipeline_mode<synchronous>, transform_indices = @transform_3, window_bounds = array<i64: 128, 128>}, {pipeline_mode = #tpu.pipeline_mode<synchronous>, transform_indices = @transform_4, window_bounds = array<i64: 1, 128>}, {pipeline_mode = #tpu.pipeline_mode<synchronous>, transform_indices = @transform_5, window_bounds = array<i64: 128, 128>}, {pipeline_mode = #tpu.pipeline_mode<synchronous>, transform_indices = @transform_6, window_bounds = array<i64: 1, 128>}, {transform_indices = @transform_7, window_bounds = array<i64: 8, 128>}]} {
    %c0_i32 = arith.constant 0 : i32
    %0 = arith.cmpi eq, %arg1, %c0_i32 : i32
    %1 = arith.extui %0 : i1 to i32
    %c0_i32_0 = arith.constant 0 : i32
    %2 = arith.cmpi ne, %1, %c0_i32_0 : i32
    scf.if %2 {
      %cst = arith.constant -1.000000e+30 : f32
      %11 = vector.broadcast %cst : f32 to vector<1x128xf32>
      %c0 = arith.constant 0 : index
      %c0_4 = arith.constant 0 : index
      %12 = vector.load %arg12[%c0, %c0_4] : memref<1x128xf32, #tpu.memory_space<vmem>>, vector<1x128xf32>
      tpu.vector_store %arg12[%c0, %c0_4], %11 {strides = array<i32>} : memref<1x128xf32, #tpu.memory_space<vmem>>, vector<1x128xf32>,
      %cst_5 = arith.constant 0.000000e+00 : f32
      %13 = vector.broadcast %cst_5 : f32 to vector<8x128xf32>
      %c0_6 = arith.constant 0 : index
      %c0_7 = arith.constant 0 : index
      %14 = vector.load %arg13[%c0_6, %c0_7] : memref<8x128xf32, #tpu.memory_space<vmem>>, vector<8x128xf32>
      tpu.vector_store %arg13[%c0_6, %c0_7], %13 {strides = array<i32>} : memref<8x128xf32, #tpu.memory_space<vmem>>, vector<8x128xf32>,
      %cst_8 = arith.constant 0.000000e+00 : f32
      %15 = vector.broadcast %cst_8 : f32 to vector<8x128xf32>
      %c0_9 = arith.constant 0 : index
      %c0_10 = arith.constant 0 : index
      %16 = vector.load %arg14[%c0_9, %c0_10] : memref<8x128xf32, #tpu.memory_space<vmem>>, vector<8x128xf32>
      tpu.vector_store %arg14[%c0_9, %c0_10], %15 {strides = array<i32>} : memref<8x128xf32, #tpu.memory_space<vmem>>, vector<8x128xf32>,
    } else {
    }
    %3 = arith.index_cast %arg0 : i32 to index
    %4 = memref.load %arg3[%3] : memref<1xi32, #tpu.memory_space<smem>>
    %5 = arith.cmpi slt, %arg1, %4 : i32
    %6 = arith.extui %5 : i1 to i32
    %c0_i32_1 = arith.constant 0 : i32
    %7 = arith.cmpi ne, %6, %c0_i32_1 : i32
    scf.if %7 {
      %c0 = arith.constant 0 : index
      %c0_4 = arith.constant 0 : index
      %11 = vector.load %arg6[%c0, %c0_4] : memref<128x128xf32, #tpu.memory_space<vmem>>, vector<128x128xf32>
      %c0_5 = arith.constant 0 : index
      %c0_6 = arith.constant 0 : index
      %12 = vector.load %arg4[%c0_5, %c0_6] : memref<1x128xi32, #tpu.memory_space<vmem>>, vector<1x128xi32>
      %c8_i32 = arith.constant 8 : i32
      %13 = arith.muli %arg0, %c8_i32 : i32
      %14 = vector.broadcast %13 : i32 to vector<1x128xi32>
      %15 = arith.subi %12, %14 : vector<1x128xi32>
      %16 = tpu.iota {dimensions = array<i32: 0>} : vector<8x128xi32>
      %17 = vector.broadcast %15 : vector<1x128xi32> to vector<8x128xi32>
      %18 = arith.cmpi eq, %16, %17 : vector<8x128xi32>
      %19 = arith.extui %18 : vector<8x128xi1> to vector<8x128xi32>
      %20 = arith.sitofp %19 : vector<8x128xi32> to vector<8x128xf32>
      %21 = arith.truncf %20 : vector<8x128xf32> to vector<8x128xbf16>
      %c0_7 = arith.constant 0 : index
      %c0_8 = arith.constant 0 : index
      %22 = vector.load %arg12[%c0_7, %c0_8] : memref<1x128xf32, #tpu.memory_space<vmem>>, vector<1x128xf32>
      %cst = arith.constant dense<0xFF800000> : vector<128xf32>
      %23 = vector.multi_reduction <maximumf>, %11, %cst [0] : vector<128x128xf32> to vector<128xf32>
      %24 = vector.shape_cast %23 : vector<128xf32> to vector<1x128xf32>
      %25 = arith.maximumf %22, %24 : vector<1x128xf32>
      %26 = arith.subf %22, %25 : vector<1x128xf32>
      %27 = math.exp %26 : vector<1x128xf32>
      %28 = vector.broadcast %25 : vector<1x128xf32> to vector<128x128xf32>
      %29 = arith.subf %11, %28 : vector<128x128xf32>
      %30 = math.exp %29 : vector<128x128xf32>
      %31 = arith.mulf %30, %11 : vector<128x128xf32>
      %32 = tpu.concatenate %30, %31 in 1 : vector<128x128xf32>, vector<128x128xf32> -> vector<128x256xf32>
      %33 = arith.truncf %32 : vector<128x256xf32> to vector<128x256xbf16>
      %cst_9 = arith.constant dense<0.000000e+00> : vector<8x256xf32>
      %34 = tpu.matmul %21, %33, %cst_9 {dimension_numbers = #tpu.dot_dimension_numbers<[1], [0], [0], [1], [0, 0, 1, 1], [], []>} : vector<8x128xbf16>, vector<128x256xbf16>, vector<8x256xf32> -> vector<8x256xf32>
      %c0_10 = arith.constant 0 : index
      %c0_11 = arith.constant 0 : index
      %35 = vector.load %arg13[%c0_10, %c0_11] : memref<8x128xf32, #tpu.memory_space<vmem>>, vector<8x128xf32>
      %36 = vector.broadcast %27 : vector<1x128xf32> to vector<8x128xf32>
      %37 = arith.mulf %35, %36 : vector<8x128xf32>
      %38 = vector.extract_strided_slice %34 {offsets = [0, 0], sizes = [8, 128], strides = [1, 1]} : vector<8x256xf32> to vector<8x128xf32>
      %39 = arith.addf %37, %38 : vector<8x128xf32>
      %c0_12 = arith.constant 0 : index
      %c0_13 = arith.constant 0 : index
      %40 = vector.load %arg13[%c0_12, %c0_13] : memref<8x128xf32, #tpu.memory_space<vmem>>, vector<8x128xf32>
      tpu.vector_store %arg13[%c0_12, %c0_13], %39 {strides = array<i32>} : memref<8x128xf32, #tpu.memory_space<vmem>>, vector<8x128xf32>,
      %c0_14 = arith.constant 0 : index
      %c0_15 = arith.constant 0 : index
      %41 = vector.load %arg14[%c0_14, %c0_15] : memref<8x128xf32, #tpu.memory_space<vmem>>, vector<8x128xf32>
      %42 = vector.broadcast %27 : vector<1x128xf32> to vector<8x128xf32>
      %43 = arith.mulf %41, %42 : vector<8x128xf32>
      %44 = vector.extract_strided_slice %34 {offsets = [0, 128], sizes = [8, 128], strides = [1, 1]} : vector<8x256xf32> to vector<8x128xf32>
      %45 = arith.addf %43, %44 : vector<8x128xf32>
      %c0_16 = arith.constant 0 : index
      %c0_17 = arith.constant 0 : index
      %46 = vector.load %arg14[%c0_16, %c0_17] : memref<8x128xf32, #tpu.memory_space<vmem>>, vector<8x128xf32>
      tpu.vector_store %arg14[%c0_16, %c0_17], %45 {strides = array<i32>} : memref<8x128xf32, #tpu.memory_space<vmem>>, vector<8x128xf32>,
      %c0_18 = arith.constant 0 : index
      %c0_19 = arith.constant 0 : index
      %47 = vector.load %arg12[%c0_18, %c0_19] : memref<1x128xf32, #tpu.memory_space<vmem>>, vector<1x128xf32>
      tpu.vector_store %arg12[%c0_18, %c0_19], %25 {strides = array<i32>} : memref<1x128xf32, #tpu.memory_space<vmem>>, vector<1x128xf32>,
    } else {
    }
    %c0_i32_2 = arith.constant 0 : i32
    %8 = arith.cmpi eq, %arg1, %c0_i32_2 : i32
    %9 = arith.extui %8 : i1 to i32
    %c0_i32_3 = arith.constant 0 : i32
    %10 = arith.cmpi ne, %9, %c0_i32_3 : i32
    scf.if %10 {
      %c0 = arith.constant 0 : index
      %c0_4 = arith.constant 0 : index
      %11 = vector.load %arg13[%c0, %c0_4] : memref<8x128xf32, #tpu.memory_space<vmem>>, vector<8x128xf32>
      %cst = arith.constant 1.000000e-16 : f32
      %12 = vector.broadcast %cst : f32 to vector<8x128xf32>
      %13 = arith.addf %11, %12 : vector<8x128xf32>
      %14 = tpu.reciprocal %13 {approx = true} : vector<8x128xf32> -> vector<8x128xf32>
      %c0_5 = arith.constant 0 : index
      %c0_6 = arith.constant 0 : index
      %15 = vector.load %arg14[%c0_5, %c0_6] : memref<8x128xf32, #tpu.memory_space<vmem>>, vector<8x128xf32>
      %16 = arith.mulf %15, %14 : vector<8x128xf32>
      %c0_7 = arith.constant 0 : index
      %c0_8 = arith.constant 0 : index
      %17 = vector.load %arg7[%c0_7, %c0_8] : memref<128x128xf32, #tpu.memory_space<vmem>>, vector<128x128xf32>
      %cst_9 = arith.constant dense<0.000000e+00> : vector<8x128xf32>
      %18 = tpu.matmul %16, %17, %cst_9 {dimension_numbers = #tpu.dot_dimension_numbers<[1], [0], [0], [1], [0, 0, 1, 1], [], []>} : vector<8x128xf32>, vector<128x128xf32>, vector<8x128xf32> -> vector<8x128xf32>
      %c0_10 = arith.constant 0 : index
      %c0_11 = arith.constant 0 : index
      %19 = vector.load %arg8[%c0_10, %c0_11] : memref<1x128xf32, #tpu.memory_space<vmem>>, vector<1x128xf32>
      %20 = vector.broadcast %19 : vector<1x128xf32> to vector<8x128xf32>
      %21 = arith.addf %18, %20 : vector<8x128xf32>
      %cst_12 = arith.constant 2.000000e+01 : f32
      %22 = vector.broadcast %cst_12 : f32 to vector<8x128xf32>
      %23 = arith.cmpf ogt, %21, %22 : vector<8x128xf32>
      %cst_13 = arith.constant 2.000000e+01 : f32
      %24 = vector.broadcast %cst_13 : f32 to vector<8x128xf32>
      %25 = arith.minimumf %21, %24 : vector<8x128xf32>
      %26 = math.exp %25 : vector<8x128xf32>
      %27 = math.log1p %26 : vector<8x128xf32>
      %28 = arith.select %23, %21, %27 : vector<8x128xi1>, vector<8x128xf32>
      %cst_14 = arith.constant 0.693147182 : f32
      %29 = vector.broadcast %cst_14 : f32 to vector<8x128xf32>
      %30 = arith.subf %28, %29 : vector<8x128xf32>
      %c0_15 = arith.constant 0 : index
      %c0_16 = arith.constant 0 : index
      %31 = vector.load %arg9[%c0_15, %c0_16] : memref<128x128xf32, #tpu.memory_space<vmem>>, vector<128x128xf32>
      %cst_17 = arith.constant dense<0.000000e+00> : vector<8x128xf32>
      %32 = tpu.matmul %30, %31, %cst_17 {dimension_numbers = #tpu.dot_dimension_numbers<[1], [0], [0], [1], [0, 0, 1, 1], [], []>} : vector<8x128xf32>, vector<128x128xf32>, vector<8x128xf32> -> vector<8x128xf32>
      %c0_18 = arith.constant 0 : index
      %c0_19 = arith.constant 0 : index
      %33 = vector.load %arg10[%c0_18, %c0_19] : memref<1x128xf32, #tpu.memory_space<vmem>>, vector<1x128xf32>
      %34 = vector.broadcast %33 : vector<1x128xf32> to vector<8x128xf32>
      %35 = arith.addf %32, %34 : vector<8x128xf32>
      %c0_20 = arith.constant 0 : index
      %c0_21 = arith.constant 0 : index
      %36 = vector.load %arg5[%c0_20, %c0_21] : memref<8x128xf32, #tpu.memory_space<vmem>>, vector<8x128xf32>
      %37 = arith.addf %36, %35 : vector<8x128xf32>
      %c0_22 = arith.constant 0 : index
      %c0_23 = arith.constant 0 : index
      %38 = vector.load %arg11[%c0_22, %c0_23] : memref<8x128xf32, #tpu.memory_space<vmem>>, vector<8x128xf32>
      tpu.vector_store %arg11[%c0_22, %c0_23], %37 {strides = array<i32>} : memref<8x128xf32, #tpu.memory_space<vmem>>, vector<8x128xf32>,
    } else {
    }
    return
  }
  func.func @transform_0(%arg0: i32, %arg1: i32, %arg2: memref<1xi32, #tpu.memory_space<smem>>, %arg3: memref<1xi32, #tpu.memory_space<smem>>) -> (i32, i32) {
    %0 = arith.index_cast %arg0 : i32 to index
    %1 = memref.load %arg2[%0] : memref<1xi32, #tpu.memory_space<smem>>
    %2 = arith.index_cast %arg0 : i32 to index
    %3 = memref.load %arg3[%2] : memref<1xi32, #tpu.memory_space<smem>>
    %c1_i32 = arith.constant 1 : i32
    %4 = arith.subi %3, %c1_i32 : i32
    %5 = arith.minsi %arg1, %4 : i32
    %6 = arith.addi %1, %5 : i32
    %c0_i32 = arith.constant 0 : i32
    %c0_i32_0 = arith.constant 0 : i32
    return %c0_i32, %6 : i32, i32
  }
  func.func @transform_1(%arg0: i32, %arg1: i32, %arg2: memref<1xi32, #tpu.memory_space<smem>>, %arg3: memref<1xi32, #tpu.memory_space<smem>>) -> (i32, i32) {
    %c0_i32 = arith.constant 0 : i32
    %c0_i32_0 = arith.constant 0 : i32
    return %arg0, %c0_i32 : i32, i32
  }
  func.func @transform_2(%arg0: i32, %arg1: i32, %arg2: memref<1xi32, #tpu.memory_space<smem>>, %arg3: memref<1xi32, #tpu.memory_space<smem>>) -> (i32, i32) {
    %0 = arith.index_cast %arg0 : i32 to index
    %1 = memref.load %arg2[%0] : memref<1xi32, #tpu.memory_space<smem>>
    %2 = arith.index_cast %arg0 : i32 to index
    %3 = memref.load %arg3[%2] : memref<1xi32, #tpu.memory_space<smem>>
    %c1_i32 = arith.constant 1 : i32
    %4 = arith.subi %3, %c1_i32 : i32
    %5 = arith.minsi %arg1, %4 : i32
    %6 = arith.addi %1, %5 : i32
    %c0_i32 = arith.constant 0 : i32
    %c0_i32_0 = arith.constant 0 : i32
    return %6, %c0_i32 : i32, i32
  }
  func.func @transform_3(%arg0: i32, %arg1: i32, %arg2: memref<1xi32, #tpu.memory_space<smem>>, %arg3: memref<1xi32, #tpu.memory_space<smem>>) -> (i32, i32) {
    %c0_i32 = arith.constant 0 : i32
    %c0_i32_0 = arith.constant 0 : i32
    %c0_i32_1 = arith.constant 0 : i32
    return %c0_i32, %c0_i32_0 : i32, i32
  }
  func.func @transform_4(%arg0: i32, %arg1: i32, %arg2: memref<1xi32, #tpu.memory_space<smem>>, %arg3: memref<1xi32, #tpu.memory_space<smem>>) -> (i32, i32) {
    %c0_i32 = arith.constant 0 : i32
    %c0_i32_0 = arith.constant 0 : i32
    %c0_i32_1 = arith.constant 0 : i32
    return %c0_i32, %c0_i32_0 : i32, i32
  }
  func.func @transform_5(%arg0: i32, %arg1: i32, %arg2: memref<1xi32, #tpu.memory_space<smem>>, %arg3: memref<1xi32, #tpu.memory_space<smem>>) -> (i32, i32) {
    %c0_i32 = arith.constant 0 : i32
    %c0_i32_0 = arith.constant 0 : i32
    %c0_i32_1 = arith.constant 0 : i32
    return %c0_i32, %c0_i32_0 : i32, i32
  }
  func.func @transform_6(%arg0: i32, %arg1: i32, %arg2: memref<1xi32, #tpu.memory_space<smem>>, %arg3: memref<1xi32, #tpu.memory_space<smem>>) -> (i32, i32) {
    %c0_i32 = arith.constant 0 : i32
    %c0_i32_0 = arith.constant 0 : i32
    %c0_i32_1 = arith.constant 0 : i32
    return %c0_i32, %c0_i32_0 : i32, i32
  }
  func.func @transform_7(%arg0: i32, %arg1: i32, %arg2: memref<1xi32, #tpu.memory_space<smem>>, %arg3: memref<1xi32, #tpu.memory_space<smem>>) -> (i32, i32) {
    %c0_i32 = arith.constant 0 : i32
    %c0_i32_0 = arith.constant 0 : i32
    return %arg0, %c0_i32 : i32, i32
  }
}

</mosaic_0001>

<bundles_post_ra>
// kernel: tpu_custom_call.1
= control target key start
LH: loop header
LB: loop body
LE: loop exit
PB: predicated region body
PF: predicated region fallthrough
CT: control target
= control target key end

     0   :  { %16 = vsyncpa [#allocation9], 0  ;;  %s875_s0 = inlined_call_operand.<no memory space> [shape: s32[1], index: 0, kind: input, shape index: {}]   ;;  %s876_s1 = inlined_call_operand.<no memory space> [shape: s32[1], index: 1, kind: input, shape index: {}]   ;;  %s877_s2 = inlined_call_operand.vmem [shape: s32[1,128], index: 2, kind: input, shape index: {}]   ;;  %s878_s3 = inlined_call_operand.hbm [shape: f32[8,128], index: 3, kind: input, shape index: {}]   ;;  %s879_s4 = inlined_call_operand.hbm [shape: f32[128,128], index: 4, kind: input, shape index: {}]   ;;  %s880_s5 = inlined_call_operand.hbm [shape: f32[128,128], index: 5, kind: input, shape index: {}]   ;;  %s881_s6 = inlined_call_operand.vmem [shape: f32[1,128], index: 6, kind: input, shape index: {}]   ;;  %s882_s7 = inlined_call_operand.hbm [shape: f32[128,128], index: 7, kind: input, shape index: {}]   ;;  %s883_s8 = inlined_call_operand.vmem [shape: f32[1,128], index: 8, kind: input, shape index: {}]   ;;  %s884_s9 = inlined_call_operand.hbm [shape: f32[8,128], index: 9, kind: output, shape index: {}]  }
   0x1   :  { %17 = vsyncpa [#allocation12], 0 }
   0x2   :  { %18 = vsyncpa [#allocation15], 0  ;;  %s464_s11 = sadd.s32 4294967295, %s876_s1 }
   0x3   :  { %19 = vsyncpa [#allocation10], 0  ;;  %p465_p0 = scmp.gt.s32.totalorder %s464_s11, 0  ;;  %s660_s12 = smov [#allocation11]  }
   0x4   :  { %s723_s13 = sshll.u32 %s660_s12, 4  ;;  %s42_s16 = sshll.u32 %s878_s3, 4  ;;  %s64_s13 = int_to_ptr.vmem [resolvable:$true] %s723_s13  ;;  %s43_s16 = int_to_ptr.hbm [resolvable:$true] %s42_s16 }
   0x5   :  { %s886_s11 = smov (%p465_p0, %s464_s11), 0  ;;  %s661_s24 = smov [#allocation8]  }
   0x6   :  { %s732_s19 = sadd.s32 %s886_s11, %s875_s0  ;;  %s44_s25 = sshll.u32 %s661_s24, 4  ;;  %s45_s25 = int_to_ptr.vmem [resolvable:$true] %s44_s25 }
   0x7   :  { %s478_s20 = sshll.u32 %s732_s19, 7  ;;  %s74_s3 = sshll.u32 %s880_s5, 4  ;;  %s75_s3 = int_to_ptr.hbm [resolvable:$true] %s74_s3 }
   0x8   :  { %s60_s23 = scalar_lea.hbm %s879_s4, %s478_s20  ;;  %s536_s11 = scalar_lea.hbm %s879_s4, 128 }
   0x9   :  { %s61_s26 = sshll.u32 %s60_s23, 4  ;;  %s62_s26 = int_to_ptr.hbm [resolvable:$true] %s61_s26 }
   0xa   :  { %s532_s29 = sshra.s32 %s62_s26, 4  ;;  %s533_s29 = int_to_ptr.hbm [resolvable:$true] %s532_s29 }
   0xb   :  { %s534_s0 = scalar_lea.hbm %s533_s29, 128  ;;  %p537_p2 = scmp.lt.s32.totalorder %s533_s29, %s879_s4 }
   0xc   :  { %p535_p1 = scmp.ne.s32.totalorder %s533_s29, %s534_s0  ;;  %p538_p3 = scmp.lt.s32.totalorder %s536_s11, %s534_s0 }
   0xe   :  { %p539_p4 = por %p538_p3, %p537_p2 }
  0x10   :  { %p540_p5 = pnand %p539_p4, %p535_p1 }
  0x12   :  { %543 = shalt.err (!%p540_p5)
}
  0x13   :  { %s662_s15 = smov 128   ;;  %s663_s17 = smov 8  }
  0x14   :  { %69 = dma.hbm_to_vmem [thread:$0]  %s62_s26, 2048, %s64_s13, [#allocation12], %s662_s15, %s662_s15, %s663_s17  }
  0x15   :  { %47 = dma.hbm_to_vmem [thread:$0]  %s43_s16, 128, %s45_s25, [#allocation9]  }
  0x16   :  { %s664_s5 = smov [#allocation13]   ;;  %s89_s22 = sshll.u32 %s882_s7, 4  ;;  %s90_s22 = int_to_ptr.hbm [resolvable:$true] %s89_s22 }
  0x17   :  { %s76_s18 = sshll.u32 %s664_s5, 4  ;;  %s665_s23 = smov [#allocation14]   ;;  %s77_s18 = int_to_ptr.vmem [resolvable:$true] %s76_s18 }
  0x18   :  { %82 = dma.hbm_to_vmem [thread:$0]  %s75_s3, 2048, %s77_s18, [#allocation12], %s662_s15, %s662_s15, %s663_s17  }
  0x19   :  { %s91_s4 = sshll.u32 %s665_s23, 4  ;;  %s92_s4 = int_to_ptr.vmem [resolvable:$true] %s91_s4 }
  0x1a   :  { %97 = dma.hbm_to_vmem [thread:$0]  %s90_s22, 2048, %s92_s4, [#allocation15], %s662_s15, %s662_s15, %s663_s17  }
  0x1b   :  { %652 = dma.done.wait [#allocation9], 128  }
  0x1c   :  { %653 = vsyncadd [#allocation9], 4294967168 }
  0x1d   :  { %654 = dma.done.wait [#allocation12], 4096  }
  0x1e   :  { %655 = vsyncadd [#allocation12], 4294963200 }
  0x1f   :  { %656 = dma.done.wait [#allocation15], 2048  }
  0x20   :  { %657 = vsyncadd [#allocation15], 4294965248  ;;  %p131_p6 = scmp.lt.s32.totalorder %s732_s19, 0  ;;  %v666_v0 = vmov -1e+30   ;;  %v667_v1 = vmov 0.0  }
  0x21   :  { %151 = vst [vmem:[#allocation2] sm:$0x1] %v666_v0  ;;  %p471_p7 = scmp.le.s32.totalorder %s876_s1, 0 }
  0x22   :  { %s888_s19 = smov (!%p131_p6, %s732_s19), 0  ;;  %152 = vst [vmem:[#allocation3] sm:$0xff] %v667_v1 }
  0x23   :  { %153 = vst [vmem:[#allocation4] sm:$0xff] %v667_v1  ;;  %s133_s16 = scalar_lea.vmem %s877_s2, %s888_s19  ;;  %158 = sbr.rel (%p471_p7) target bundleno = 250 (0xfa), region = 53 }
  0x28   :  { %v761_v2 = vld [vmem:[#allocation11] sm:$0xff]  ;;  %v763_v3 = vld [vmem:[#allocation11 + $0x8] sm:$0xff]  ;;  %v765_v4 = vld [vmem:[#allocation11 + $0x10] sm:$0xff] }
  0x29   :  { %v767_v5 = vld [vmem:[#allocation11 + $0x18] sm:$0xff]  ;;  %v769_v6 = vld [vmem:[#allocation11 + $0x20] sm:$0xff]  ;;  %v771_v7 = vld [vmem:[#allocation11 + $0x28] sm:$0xff] }
  0x2a   :  { %v773_v8 = vld [vmem:[#allocation11 + $0x30] sm:$0xff]  ;;  %v775_v9 = vld [vmem:[#allocation11 + $0x38] sm:$0xff]  ;;  %v777_v10 = vld [vmem:[#allocation11 + $0x40] sm:$0xff]  ;;  %v187_v11 = vmax.f32 %v761_v2, %v769_v6  ;;  %v188_v12 = vmax.f32 %v763_v3, %v771_v7 }
  0x2b   :  { %v783_v13 = vld [vmem:[#allocation11 + $0x48] sm:$0xff]  ;;  %v785_v14 = vld [vmem:[#allocation11 + $0x50] sm:$0xff]  ;;  %v787_v15 = vld [vmem:[#allocation11 + $0x58] sm:$0xff]  ;;  %v189_v16 = vmax.f32 %v765_v4, %v773_v8  ;;  %v190_v17 = vmax.f32 %v767_v5, %v775_v9 }
  0x2c   :  { %v793_v18 = vld [vmem:[#allocation11 + $0x60] sm:$0xff]  ;;  %v795_v19 = vld [vmem:[#allocation11 + $0x68] sm:$0xff]  ;;  %v173_v20 = vld [vmem:[#allocation11 + $0x70] sm:$0xff]  ;;  %v191_v21 = vmax.f32 %v187_v11, %v777_v10  ;;  %v192_v22 = vmax.f32 %v188_v12, %v783_v13 }
  0x2d   :  { %v174_v23 = vld [vmem:[#allocation11 + $0x78] sm:$0xff]  ;;  %v193_v24 = vmax.f32 %v189_v16, %v785_v14  ;;  %v194_v25 = vmax.f32 %v190_v17, %v787_v15  ;;  %v803_v38 = vld [vmem:[#allocation2] sm:$0x1] }
  0x2e   :  { %v195_v26 = vmax.f32 %v191_v21, %v793_v18  ;;  %v196_v27 = vmax.f32 %v192_v22, %v795_v19 }
  0x2f   :  { %v197_v28 = vmax.f32 %v193_v24, %v173_v20  ;;  %v198_v29 = vmax.f32 %v194_v25, %v174_v23 }
  0x30   :  { %v199_v30 = vmax.f32 %v195_v26, %v196_v27 }
  0x31   :  { %v200_v31 = vmax.f32 %v197_v28, %v198_v29 }
  0x33   :  { %v201_v32 = vmax.f32 %v199_v30, %v200_v31 }
  0x35   :  { %v202_v33 = vrot.slane %v201_v32, 4 }
  0x37   :  { %v203_v34 = vmax.f32 %v201_v32, %v202_v33 }
  0x39   :  { %v204_v35 = vrot.slane %v203_v34, 2 }
  0x3b   :  { %v205_v36 = vmax.f32 %v203_v34, %v204_v35 }
  0x3d   :  { %v206_v37 = vrot.slane %v205_v36, 1 }
  0x3f   :  { %v207_v39 = vmax.f32 %v205_v36, %v206_v37 }
  0x41   :  { %v806_v40 = vmax.f32 %v803_v38, %v207_v39 }
  0x43   :  { %v809_v41 = vperm.slane %v806_v40, 0  ;;  %332 = vst [vmem:[#allocation2] sm:$0x1] %v806_v40 }
  0x45   :  { %v229_v42 = vsub.f32 %v173_v20, %v809_v41  ;;  %v230_v43 = vsub.f32 %v174_v23, %v809_v41  ;;  %v227_v44 = vsub.f32 %v793_v18, %v809_v41  ;;  %v228_v45 = vsub.f32 %v795_v19, %v809_v41 }
  0x46   :  { %v225_v46 = vsub.f32 %v785_v14, %v809_v41  ;;  %v226_v47 = vsub.f32 %v787_v15, %v809_v41  ;;  %v223_v51 = vsub.f32 %v777_v10, %v809_v41  ;;  %v224_v53 = vsub.f32 %v783_v13, %v809_v41 }
  0x47   :  { %v259_v48 = vmul.f32 1.442695, %v229_v42  ;;  %v261_v49 = vmul.f32 1.442695, %v230_v43  ;;  %v255_v50 = vmul.f32 1.442695, %v227_v44  ;;  %v221_v57 = vsub.f32 %v773_v8, %v809_v41 }
  0x48   :  { %v257_v52 = vmul.f32 1.442695, %v228_v45  ;;  %v251_v54 = vmul.f32 1.442695, %v225_v46  ;;  %v253_v55 = vmul.f32 1.442695, %v226_v47  ;;  %v222_v59 = vsub.f32 %v775_v9, %v809_v41 }
  0x49   :  { %490 = vpow2.f32 %v259_v48  ;;  %v247_v56 = vmul.f32 1.442695, %v223_v51  ;;  %v249_v58 = vmul.f32 1.442695, %v224_v53  ;;  %v219_v60 = vsub.f32 %v769_v6, %v809_v41 }
  0x4a   :  { %492 = vpow2.f32 %v261_v49  ;;  %v220_v61 = vsub.f32 %v771_v7, %v809_v41  ;;  %v215_v62 = vsub.f32 %v761_v2, %v809_v41  ;;  %v243_v0 = vmul.f32 1.442695, %v221_v57 }
  0x4b   :  { %494 = vpow2.f32 %v255_v50  ;;  %v245_v12 = vmul.f32 1.442695, %v222_v59  ;;  %v216_v16 = vsub.f32 %v763_v3, %v809_v41  ;;  %v239_v24 = vmul.f32 1.442695, %v219_v60 }
  0x4c   :  { %496 = vpow2.f32 %v257_v52  ;;  %v241_v27 = vmul.f32 1.442695, %v220_v61  ;;  %v217_v28 = vsub.f32 %v765_v4, %v809_v41  ;;  %v231_v29 = vmul.f32 1.442695, %v215_v62 }
  0x4d   :  { %498 = vpow2.f32 %v251_v54  ;;  %v233_v34 = vmul.f32 1.442695, %v216_v16  ;;  %v321_v16 = vld [vmem:[#allocation3] sm:$0xff] }
  0x4e   :  { %500 = vpow2.f32 %v253_v55  ;;  %v235_v43 = vmul.f32 1.442695, %v217_v28 }
  0x4f   :  { %v491_v63 = vpop.eup %490  ;;  %502 = vpow2.f32 %v247_v56 }
  0x50   :  { %v493_v1 = vpop.eup %492  ;;  %v277_v11 = vmul.f32 %v491_v63, %v173_v20  ;;  %504 = vpow2.f32 %v249_v58 }
  0x51   :  { %v495_v17 = vpop.eup %494  ;;  %v293_v21 = vpack.c.bf16 %v493_v1, %v491_v63  ;;  %v278_v22 = vmul.f32 %v493_v1, %v174_v23  ;;  %506 = vpow2.f32 %v243_v0  ;;  %v218_v23 = vsub.f32 %v767_v5, %v809_v41 }
  0x52   :  { %v497_v25 = vpop.eup %496  ;;  %v275_v26 = vmul.f32 %v495_v17, %v793_v18  ;;  %508 = vpow2.f32 %v245_v12  ;;  %v209_v18 = vsub.f32 %v803_v38, %v806_v40 }
  0x53   :  { %v499_v30 = vpop.eup %498  ;;  %295 = vmatpush.bf16.msra.mxu0 %v293_v21  ;;  %v294_v20 = vpack.c.bf16 %v278_v22, %v277_v11  ;;  %v291_v31 = vpack.c.bf16 %v497_v25, %v495_v17  ;;  %v276_v32 = vmul.f32 %v497_v25, %v795_v19  ;;  %510 = vpow2.f32 %v239_v24  ;;  %v328_v17 = vld [vmem:[#allocation4] sm:$0xff] }
  0x54   :  { %v501_v33 = vpop.eup %500  ;;  %v273_v37 = vmul.f32 %v499_v30, %v785_v14  ;;  %512 = vpow2.f32 %v241_v27  ;;  %v237_v44 = vmul.f32 1.442695, %v218_v23 }
  0x55   :  { %v503_v35 = vpop.eup %502  ;;  %308 = vmatpush.bf16.msra.mxu1 %v294_v20  ;;  %v292_v36 = vpack.c.bf16 %v276_v32, %v275_v26  ;;  %v274_v39 = vmul.f32 %v501_v33, %v787_v15  ;;  %v289_v19 = vpack.c.bf16 %v501_v33, %v499_v30  ;;  %514 = vpow2.f32 %v231_v29 }
  0x56   :  { %v505_v42 = vpop.eup %504  ;;  %516 = vpow2.f32 %v233_v34  ;;  %v271_v46 = vmul.f32 %v503_v35, %v777_v10 }
  0x57   :  { %296 = vmatpush.bf16.msra.mxu0 %v291_v31  ;;  %v507_v41 = vpop.eup %506  ;;  %v290_v45 = vpack.c.bf16 %v274_v39, %v273_v37  ;;  %v272_v47 = vmul.f32 %v505_v42, %v783_v13  ;;  %v287_v15 = vpack.c.bf16 %v505_v42, %v503_v35  ;;  %518 = vpow2.f32 %v235_v43 }
  0x58   :  { %v509_v48 = vpop.eup %508  ;;  %520 = vpow2.f32 %v237_v44  ;;  %v269_v52 = vmul.f32 %v507_v41, %v773_v8 }
  0x59   :  { %309 = vmatpush.bf16.msra.mxu1 %v292_v36  ;;  %v511_v14 = vpop.eup %510  ;;  %v288_v51 = vpack.c.bf16 %v272_v47, %v271_v46  ;;  %v270_v53 = vmul.f32 %v509_v48, %v775_v9  ;;  %v285_v10 = vpack.c.bf16 %v509_v48, %v507_v41  ;;  %v179_v9 = vlaneseq }
  0x5a   :  { %v513_v49 = vpop.eup %512  ;;  %v267_v58 = vmul.f32 %v511_v14, %v769_v6  ;;  %v489_v6 = vld [vmem:[%s133_s16] ss:$0 sm:$0xff] }
  0x5b   :  { %297 = vmatpush.bf16.msra.mxu0 %v289_v19  ;;  %v515_v50 = vpop.eup %514  ;;  %v286_v57 = vpack.c.bf16 %v270_v53, %v269_v52  ;;  %v268_v59 = vmul.f32 %v513_v49, %v771_v7  ;;  %v283_v8 = vpack.c.bf16 %v513_v49, %v511_v14  ;;  %v180_v0 = vshrl.u32 %v179_v9, 7 }
  0x5c   :  { %v517_v54 = vpop.eup %516  ;;  %v263_v55 = vmul.f32 %v515_v50, %v761_v2 }
  0x5d   :  { %310 = vmatpush.bf16.msra.mxu1 %v290_v45  ;;  %v264_v13 = vmul.f32 %v517_v54, %v763_v3  ;;  %v519_v56 = vpop.eup %518  ;;  %v284_v62 = vpack.c.bf16 %v268_v59, %v267_v58  ;;  %v279_v1 = vpack.c.bf16 %v517_v54, %v515_v50  ;;  %vm182_vm0 = vcmp.eq.s32.totalorder %v180_v0, %v489_v6 }
  0x5e   :  { %v521_v61 = vpop.eup %520  ;;  %v265_v2 = vmul.f32 %v519_v56, %v765_v4  ;;  %vm473_vm1 = vmpackc.low %vm182_vm0, %vm182_vm0  ;;  %v668_v4 = vmov 1.0|1.0  }
  0x5f   :  { %298 = vmatpush.bf16.msra.mxu0 %v287_v15  ;;  %v280_v60 = vpack.c.bf16 %v264_v13, %v263_v55  ;;  %v266_v63 = vmul.f32 %v521_v61, %v767_v5  ;;  %v281_v3 = vpack.c.bf16 %v521_v61, %v519_v56  ;;  %v210_v5 = vmul.f32 1.442695, %v209_v18 }
  0x61   :  { %311 = vmatpush.bf16.msra.mxu1 %v288_v51  ;;  %v282_v7 = vpack.c.bf16 %v266_v63, %v265_v2  ;;  %522 = vpow2.f32 %v210_v5 }
  0x63   :  { %299 = vmatpush.bf16.msra.mxu0 %v285_v10 }
  0x65   :  { %312 = vmatpush.bf16.msra.mxu1 %v286_v57 }
  0x67   :  { %300 = vmatpush.bf16.msra.mxu0 %v283_v8  ;;  %v523_v11 = vpop.eup %522 }
  0x68   :  { %v323_v12 = vperm.slane %v523_v11, 0 }
  0x69   :  { %313 = vmatpush.bf16.msra.mxu1 %v284_v62 }
  0x6a   :  { %v325_v21 = vmul.f32 %v323_v12, %v321_v16  ;;  %v329_v22 = vmul.f32 %v328_v17, %v323_v12 }
  0x6b   :  { %301 = vmatpush.bf16.msra.mxu0 %v281_v3 }
  0x6d   :  { %314 = vmatpush.bf16.msra.mxu1 %v282_v7 }
  0x6f   :  { %302 = vmatpush.bf16.msra.mxu0 %v279_v1 }
  0x71   :  { %315 = vmatpush.bf16.msra.mxu1 %v280_v60 }
  0x72   :  { %474 = vmatmul.msk.bf16.vlgmr.msra.gmra.mxu0 %vm473_vm1, %v668_v4 }
  0x74   :  { %476 = vmatmul.msk.bf16.vlgmr.msra.gmra.mxu1 %vm473_vm1, %v668_v4 }
  0xef   :  { %v304_v24 = vpop.f32.mrf.mxu0 }
  0xf0   :  { %v326_v25 = vadd.f32 %v325_v21, %v304_v24 }
  0xf1   :  { %v317_v26 = vpop.f32.mrf.mxu1 }
  0xf2   :  { %327 = vst [vmem:[#allocation3] sm:$0xff] %v326_v25  ;;  %v330_v27 = vadd.f32 %v329_v22, %v317_v26 }
  0xf4   :  { %331 = vst [vmem:[#allocation4] sm:$0xff] %v330_v27 }
  0xf7   :  { %v306_v28 = vpop.f32.mrf.mxu0 }
  0xf9   :  { %v319_v29 = vpop.f32.mrf.mxu1 }
  0xfa PF:  { %v356_v30 = vld [vmem:[#allocation13 + $0x78] sm:$0xff]  ;;  %v355_v20 = vld [vmem:[#allocation13 + $0x70] sm:$0xff]  ;;  %v354_v38 = vld [vmem:[#allocation13 + $0x68] sm:$0xff]  ;;  %s669_s28 = smov [#allocation16]   ;;  %s446_s30 = sshll.u32 %s884_s9, 4  ;;  %s447_s30 = int_to_ptr.hbm [resolvable:$true] %s446_s30 }
  0xfb   :  { %361 = vmatpush.msra.mxu0 %v356_v30  ;;  %v353_v40 = vld [vmem:[#allocation13 + $0x60] sm:$0xff]  ;;  %v352_v31 = vld [vmem:[#allocation13 + $0x58] sm:$0xff]  ;;  %v351_v33 = vld [vmem:[#allocation13 + $0x50] sm:$0xff]  ;;  %s444_s3 = sshll.u32 %s669_s28, 4  ;;  %s445_s3 = int_to_ptr.vmem [resolvable:$true] %s444_s3 }
  0xfc   :  { %v411_v32 = vld [vmem:[#allocation14 + $0x78] sm:$0xff]  ;;  %v350_v23 = vld [vmem:[#allocation13 + $0x48] sm:$0xff]  ;;  %v349_v34 = vld [vmem:[#allocation13 + $0x40] sm:$0xff] }
  0xfd   :  { %362 = vmatpush.msra.mxu0 %v355_v20  ;;  %416 = vmatpush.msra.mxu1 %v411_v32  ;;  %v336_v18 = vld [vmem:[#allocation3] sm:$0xff]  ;;  %v348_v35 = vld [vmem:[#allocation13 + $0x38] sm:$0xff]  ;;  %v347_v37 = vld [vmem:[#allocation13 + $0x30] sm:$0xff] }
  0xfe   :  { %v337_v36 = vadd.f32 1e-16, %v336_v18  ;;  %v346_v39 = vld [vmem:[#allocation13 + $0x28] sm:$0xff]  ;;  %v345_v42 = vld [vmem:[#allocation13 + $0x20] sm:$0xff]  ;;  %v344_v19 = vld [vmem:[#allocation13 + $0x18] sm:$0xff] }
  0xff   :  { %363 = vmatpush.msra.mxu0 %v354_v38  ;;  %v343_v43 = vld [vmem:[#allocation13 + $0x10] sm:$0xff]  ;;  %v342_v45 = vld [vmem:[#allocation13 + $0x8] sm:$0xff]  ;;  %v341_v46 = vld [vmem:[#allocation13] sm:$0xff] }
 0x100   :  { %526 = vrcp.f32 %v337_v36  ;;  %v339_v41 = vld [vmem:[#allocation4] sm:$0xff]  ;;  %v409_v14 = vld [vmem:[#allocation14 + $0x68] sm:$0xff]  ;;  %v408_v15 = vld [vmem:[#allocation14 + $0x60] sm:$0xff] }
 0x101   :  { %364 = vmatpush.msra.mxu0 %v353_v40  ;;  %v410_v48 = vld [vmem:[#allocation14 + $0x70] sm:$0xff]  ;;  %v407_v49 = vld [vmem:[#allocation14 + $0x58] sm:$0xff]  ;;  %v405_v51 = vld [vmem:[#allocation14 + $0x48] sm:$0xff] }
 0x102   :  { %417 = vmatpush.msra.mxu1 %v410_v48  ;;  %v406_v50 = vld [vmem:[#allocation14 + $0x50] sm:$0xff]  ;;  %v404_v52 = vld [vmem:[#allocation14 + $0x40] sm:$0xff]  ;;  %v403_v53 = vld [vmem:[#allocation14 + $0x38] sm:$0xff] }
 0x103   :  { %365 = vmatpush.msra.mxu0 %v352_v31  ;;  %v402_v54 = vld [vmem:[#allocation14 + $0x30] sm:$0xff]  ;;  %v401_v55 = vld [vmem:[#allocation14 + $0x28] sm:$0xff]  ;;  %v400_v10 = vld [vmem:[#allocation14 + $0x20] sm:$0xff] }
 0x104   :  { %418 = vmatpush.msra.mxu1 %v409_v14  ;;  %v399_v13 = vld [vmem:[#allocation14 + $0x18] sm:$0xff]  ;;  %v398_v56 = vld [vmem:[#allocation14 + $0x10] sm:$0xff]  ;;  %v397_v57 = vld [vmem:[#allocation14 + $0x8] sm:$0xff] }
 0x105   :  { %366 = vmatpush.msra.mxu0 %v351_v33  ;;  %v396_v58 = vld [vmem:[#allocation14] sm:$0xff]  ;;  %v436_v17 = vld [vmem:[#allocation8] sm:$0xff] }
 0x106   :  { %v527_v44 = vpop.eup %526  ;;  %419 = vmatpush.msra.mxu1 %v408_v15  ;;  %v524_v59 = vld [vmem:[%s881_s6] ss:$0 sm:$0xff] }
 0x107   :  { %367 = vmatpush.msra.mxu0 %v350_v23  ;;  %v340_v47 = vmul.f32 %v527_v44, %v339_v41  ;;  %v525_v12 = vld [vmem:[%s883_s8] ss:$0 sm:$0xff] }
 0x108   :  { %420 = vmatpush.msra.mxu1 %v407_v49 }
 0x109   :  { %368 = vmatpush.msra.mxu0 %v349_v34 }
 0x10a   :  { %421 = vmatpush.msra.mxu1 %v406_v50 }
 0x10b   :  { %369 = vmatpush.msra.mxu0 %v348_v35 }
 0x10c   :  { %422 = vmatpush.msra.mxu1 %v405_v51 }
 0x10d   :  { %370 = vmatpush.msra.mxu0 %v347_v37 }
 0x10e   :  { %423 = vmatpush.msra.mxu1 %v404_v52 }
 0x10f   :  { %371 = vmatpush.msra.mxu0 %v346_v39 }
 0x110   :  { %424 = vmatpush.msra.mxu1 %v403_v53 }
 0x111   :  { %372 = vmatpush.msra.mxu0 %v345_v42 }
 0x112   :  { %425 = vmatpush.msra.mxu1 %v402_v54 }
 0x113   :  { %373 = vmatpush.msra.mxu0 %v344_v19 }
 0x114   :  { %426 = vmatpush.msra.mxu1 %v401_v55 }
 0x115   :  { %374 = vmatpush.msra.mxu0 %v343_v43 }
 0x116   :  { %427 = vmatpush.msra.mxu1 %v400_v10 }
 0x117   :  { %375 = vmatpush.msra.mxu0 %v342_v45 }
 0x118   :  { %428 = vmatpush.msra.mxu1 %v399_v13 }
 0x119   :  { %376 = vmatpush.msra.mxu0 %v341_v46 }
 0x11a   :  { %377 = vmatmul.f32.vlgmr.msra.gmra.mxu0 %v340_v47  ;;  %429 = vmatpush.msra.mxu1 %v398_v56 }
 0x11c   :  { %430 = vmatpush.msra.mxu1 %v397_v57 }
 0x11e   :  { %431 = vmatpush.msra.mxu1 %v396_v58 }
 0x197   :  { %v378_v60 = vpop.f32.mrf.mxu0 }
 0x198   :  { %v379_v61 = vadd.f32 %v524_v59, %v378_v60 }
 0x19a   :  { %v382_v8 = vmin.f32 %v379_v61, 20.0  ;;  %vm381_vm3 = vcmp.gt.f32.partialorder %v379_v61, 20.0 }
 0x19c   :  { %v383_v9 = vmul.f32 1.442695, %v382_v8 }
 0x19e   :  { %528 = vpow2.f32 %v383_v9 }
 0x1a4   :  { %v529_v62 = vpop.eup %528 }
 0x1a5   :  { %v385_v2 = vadd.f32 1.0, %v529_v62  ;;  %v388_v63 = vmul.f32 -0.5, %v529_v62  ;;  %v391_v0 = vand.u32 2147483647, %v529_v62 }
 0x1a7   :  { %530 = vlog2.f32 %v385_v2  ;;  %v389_v3 = vadd.f32 1.0, %v388_v63  ;;  %vm392_vm2 = vcmp.lt.f32.partialorder %v391_v0, 0.0004427343 }
 0x1a9   :  { %v390_v1 = vmul.f32 %v529_v62, %v389_v3 }
 0x1ad   :  { %v531_v6 = vpop.eup %530 }
 0x1ae   :  { %v387_v7 = vmul.f32 0.6931472, %v531_v6 }
 0x1b0   :  { %v393_v4 = vsel %vm392_vm2, %v390_v1, %v387_v7 }
 0x1b1   :  { %v394_v5 = vsel %vm381_vm3, %v379_v61, %v393_v4 }
 0x1b2   :  { %v477_v11 = vadd.f32 -0.6931472, %v394_v5 }
 0x1b4   :  { %432 = vmatmul.f32.vlgmr.msra.gmra.mxu1 %v477_v11 }
 0x231   :  { %v433_v16 = vpop.f32.mrf.mxu1 }
 0x232   :  { %v434_v21 = vadd.f32 %v525_v12, %v433_v16 }
 0x234   :  { %v437_v22 = vadd.f32 %v436_v17, %v434_v21 }
 0x236   :  { %438 = vst [vmem:[#allocation16] sm:$0xff] %v437_v22 }
 0x237   :  { %449 = dma.vmem_to_hbm [thread:$0]  %s445_s3, 128, %s447_s30, [#allocation10]  }
 0x238   :  { %658 = dma.done.wait [#allocation10], 128  }
 0x239   :  { %659 = vsyncadd [#allocation10], 4294967168 }
 0x23a   :  { %454 = vsyncpa [#allocation9], 1 }
 0x23b   :  { %455 = vsyncpa [#allocation12], 1 }
 0x23c   :  { %456 = vsyncpa [#allocation15], 1 }
 0x23d   :  { %457 = vsyncpa [#allocation10], 1 }

</bundles_post_ra>
